<compile_context>
chip_gen: v5e
topology: v5e:2x2
jax: 0.10.0
libtpu: 0.0.40
codegen_flags: <defaults>
</compile_context>

<pallas_src>
import functools

import jax
import jax.numpy as jnp
from jax.experimental import pallas as pl
from jax.experimental.pallas import tpu as pltpu


def _phys_vmem_bytes():
    try:
        return int(pltpu.get_tpu_info().vmem_capacity_bytes)
    except Exception:
        return 64 * 1024 * 1024          # conservative (v7x-sized) fallback


_PHYS_VMEM = _phys_vmem_bytes()
# Never request the whole physical VMEM (v7x has only 64 MiB per TensorCore).
_VMEM_LIMIT = min(64 * 1024 * 1024, (_PHYS_VMEM * 3) // 4)
# Budget for the in-kernel working set, leaving headroom for Mosaic internals.
_WORKSET_BUDGET = (_VMEM_LIMIT * 3) // 4

_MAX_TILE_ROWS_CE = 1024       # CE row tile cap (per-row work bounded by tile_v)
_MAX_TILE_ROWS_STATS = 2048    # bigger tiles amortize the (F,F) accumulator RMW
_VOCAB_TILE = 2048             # lane tile for the 2-D online-LSE CE grid
_SMALL_VOCAB = 4096            # below this keep the whole vocab in one tile
_NEG_HUGE = -1e30              # finite "-inf" (avoids inf/nan special handling)


def _sublane_multiple(dtype):
    # f32 -> 8, bf16 -> 16, int8/fp8 -> 32 (native sublane packing)
    return max(8, 32 // jnp.dtype(dtype).itemsize)


def _round_up(x, m):
    return ((x + m - 1) // m) * m


def _pick_tile_rows(n_rows, row_elems, dtype, *, budget, max_rows,
                    extra_f32_temps=3):
    """Largest row tile whose working set (double-buffered native input window
    + ~extra_f32_temps live f32 full-tile temporaries) fits `budget`, as a
    multiple of the dtype's sublane packing, capped at max_rows / what n_rows
    actually needs."""
    itemsize = jnp.dtype(dtype).itemsize
    mult = _sublane_multiple(dtype)
    per_row = max(1, row_elems) * (2 * itemsize + 4 * extra_f32_temps)
    cap = (budget // per_row) // mult * mult
    cap = max(mult, min(max_rows, cap))
    need = _round_up(max(n_rows, 1), mult)
    return int(min(cap, need))


def _contract_dim0(a, b):
    # a: (K, M), b: (K, N) -> (M, N) == a.T @ b  (MXU, f32 accumulation)
    return jax.lax.dot_general(a, b, (((0,), (0,)), ((), ())),
                               preferred_element_type=jnp.float32)


# ----------------------------------------------------------------------------
# Task loss: shifted cross-entropy with ignore_index = -100
# 2-D grid: (row tiles  [parallel])  x  (vocab tiles [arbitrary], online LSE)
# ----------------------------------------------------------------------------
def _ce_kernel(logits_ref, labels_ref, out_ref, m_ref, l_ref, t_ref,
               *, vocab, tile_v, mask_vocab):
    j = pl.program_id(1)

    @pl.when(j == 0)
    def _():
        m_ref[...] = jnp.full_like(m_ref, _NEG_HUGE)
        l_ref[...] = jnp.zeros_like(l_ref)
        t_ref[...] = jnp.zeros_like(t_ref)

    logits = logits_ref[...].astype(jnp.float32)             # (T, tile_v)
    labels = labels_ref[...]                                  # (T, 1) int32
    col = j * tile_v + jax.lax.broadcasted_iota(jnp.int32, logits.shape, 1)
    if mask_vocab:                                            # ragged vocab tile
        logits = jnp.where(col < vocab, logits, _NEG_HUGE)

    # running target logit: the label matches at most one vocab tile per row;
    # rows with label == -100 (ignore / shift / padding) never match.
    onehot = col == labels
    t_ref[...] += jnp.sum(jnp.where(onehot, logits, 0.0), axis=1, keepdims=True)

    # online logsumexp
    m_prev = m_ref[...]
    m_new = jnp.maximum(m_prev, jnp.max(logits, axis=1, keepdims=True))
    l_ref[...] = (l_ref[...] * jnp.exp(m_prev - m_new)
                  + jnp.sum(jnp.exp(logits - m_new), axis=1, keepdims=True))
    m_ref[...] = m_new

    @pl.when(j == pl.num_programs(1) - 1)
    def _():
        valid = labels != -100
        lse = m_ref[...] + jnp.log(l_ref[...])
        per_row = jnp.where(valid, lse - t_ref[...], 0.0)
        loss_sum = jnp.sum(per_row)
        count = jnp.sum(valid.astype(jnp.float32))
        # lane-dense per-row-tile partial: lane 0 = loss sum, lane 1 = count
        lane = jax.lax.broadcasted_iota(jnp.int32, out_ref.shape, 2)
        out_ref[...] = jnp.where(lane == 0, loss_sum,
                                 jnp.where(lane == 1, count, 0.0))


def task_loss(logits, labels):
    """Shifted cross-entropy (matches nn.CrossEntropyLoss(ignore_index=-100))."""
    B, S, V = logits.shape
    n = B * S
    flat_logits = logits.reshape(n, V)        # free leading-dim merge, no cast

    # row (b, s) is scored against labels[b, s+1]; last position is ignored.
    lb = jnp.concatenate(
        [labels[:, 1:], jnp.full((B, 1), -100, dtype=labels.dtype)], axis=1)
    lb = lb.reshape(-1).astype(jnp.int32)

    tile_v = V if V <= _SMALL_VOCAB else _VOCAB_TILE
    mask_vocab = (V % tile_v) != 0
    vocab_tiles = int(pl.cdiv(V, tile_v))

    tile_rows = _pick_tile_rows(n, tile_v, logits.dtype,
                                budget=_WORKSET_BUDGET,
                                max_rows=_MAX_TILE_ROWS_CE)
    row_tiles = int(pl.cdiv(n, tile_rows))
    n_pad = row_tiles * tile_rows
    lb = jnp.pad(lb, (0, n_pad - n), constant_values=-100).reshape(n_pad, 1)

    parts = pl.pallas_call(
        functools.partial(_ce_kernel, vocab=V, tile_v=tile_v,
                          mask_vocab=mask_vocab),
        out_shape=jax.ShapeDtypeStruct((row_tiles, 1, 128), jnp.float32),
        grid_spec=pltpu.PrefetchScalarGridSpec(
            num_scalar_prefetch=0,
            grid=(row_tiles, vocab_tiles),
            in_specs=[pl.BlockSpec((tile_rows, tile_v), lambda i, j: (i, j)),
                      pl.BlockSpec((tile_rows, 1), lambda i, j: (i, 0))],
            out_specs=pl.BlockSpec((1, 1, 128), lambda i, j: (i, 0, 0)),
            scratch_shapes=[pltpu.VMEM((tile_rows, 1), jnp.float32),
                            pltpu.VMEM((tile_rows, 1), jnp.float32),
                            pltpu.VMEM((tile_rows, 1), jnp.float32)]),
        compiler_params=pltpu.CompilerParams(
            dimension_semantics=("parallel", "arbitrary"),
            vmem_limit_bytes=_VMEM_LIMIT),
    )(flat_logits, lb)
    return jnp.sum(parts[:, 0, 0]) / jnp.sum(parts[:, 0, 1])


# ----------------------------------------------------------------------------
# Safety loss: BCE on probabilities + margin terms (plain JAX — scalar scale)
# ----------------------------------------------------------------------------
def safety_loss(scores, labels, margin=0.1, safety_weight=1.0):
    p = scores.astype(jnp.float32).reshape(-1)
    y = labels.astype(jnp.float32).reshape(-1)
    logp = jnp.maximum(jnp.log(p), -100.0)             # torch BCELoss clamps log
    log1mp = jnp.maximum(jnp.log(1.0 - p), -100.0)
    bce = -jnp.mean(y * logp + (1.0 - y) * log1mp)

    safe = (y == 0.0).astype(jnp.float32)
    unsafe = (y == 1.0).astype(jnp.float32)
    n_safe = jnp.sum(safe)
    n_unsafe = jnp.sum(unsafe)
    safe_term = jnp.sum(jnp.maximum(p - margin, 0.0) * safe)
    unsafe_term = jnp.sum(jnp.maximum(1.0 - margin - p, 0.0) * unsafe)
    margin_loss = (jnp.where(n_safe > 0, safe_term / jnp.maximum(n_safe, 1.0), 0.0)
                   + jnp.where(n_unsafe > 0,
                               unsafe_term / jnp.maximum(n_unsafe, 1.0), 0.0))
    return safety_weight * (bce + 0.1 * margin_loss)


# ----------------------------------------------------------------------------
# Feature statistics kernel: one pass over [N, F] activations producing
# per-chunk partial Gram + column stats; the FxF epilogue runs in plain JAX.
# ----------------------------------------------------------------------------
def _feature_stats_kernel(x_ref, gram_ref, stats_ref, *, n_total, n_features,
                          tile_rows, steps_per_chunk, needs_mask):
    c = pl.program_id(0)
    j = pl.program_id(1)

    @pl.when(j == 0)
    def _():
        gram_ref[...] = jnp.zeros_like(gram_ref)
        stats_ref[...] = jnp.zeros_like(stats_ref)

    tile_idx = c * steps_per_chunk + j

    def accum(x_nat, x32, sig):
        # big-K (K = tile_rows) MXU update of X^T X; native dtype fed straight
        # to the MXU (bf16 stays bf16, f32 accumulation).
        gram_ref[...] += _contract_dim0(x_nat, x_nat)
        colsq = jnp.sum(x32 * x32, axis=0, keepdims=True)
        colsum = jnp.sum(x32, axis=0, keepdims=True)
        sigsum = jnp.sum(sig, axis=0, keepdims=True)
        usage = jnp.sum((jnp.abs(x32) > 0.01).astype(jnp.float32),
                        axis=0, keepdims=True)
        # merge the four (1,F) stats into a single unmasked (8,F) store
        r = jax.lax.broadcasted_iota(jnp.int32, (8, n_features), 0)
        upd = (jnp.where(r == 0, colsq, 0.0) + jnp.where(r == 1, colsum, 0.0)
               + jnp.where(r == 2, sigsum, 0.0) + jnp.where(r == 3, usage, 0.0))
        stats_ref[...] += upd

    if not needs_mask:
        # every tile is full and fully valid: no masking on the hot path
        x_nat = x_ref[...]
        x32 = x_nat.astype(jnp.float32)
        accum(x_nat, x32, jax.nn.sigmoid(x32))
    else:
        last_full = n_total // tile_rows   # tiles < last_full are fully valid

        @pl.when(tile_idx < last_full)
        def _():
            x_nat = x_ref[...]
            x32 = x_nat.astype(jnp.float32)
            accum(x_nat, x32, jax.nn.sigmoid(x32))

        @pl.when(tile_idx >= last_full)    # ragged / padded tiles only
        def _():
            rowv = (tile_idx * tile_rows
                    + jax.lax.broadcasted_iota(jnp.int32, (tile_rows, 1), 0)
                    ) < n_total
            x_nat = jnp.where(rowv, x_ref[...], 0.0).astype(x_ref.dtype)
            x32 = x_nat.astype(jnp.float32)
            sig = jnp.where(rowv, jax.nn.sigmoid(x32), 0.0)
            accum(x_nat, x32, sig)


def _feature_epilogue(gram, colsq, colsum, sigsum, usage, n, F):
    """Once-per-call FxF epilogue in plain JAX (keeps ~6-8 (F,F) f32 temps out
    of VMEM and off the v7x 64 MiB budget)."""
    off = 1.0 - jnp.eye(F, dtype=jnp.float32)

    # --- DiversityLoss.correlation_loss -------------------------------------
    inv_norm = 1.0 / jnp.maximum(jnp.sqrt(colsq), 1e-12)         # (F,)
    corr_abs = jnp.abs(gram) * (inv_norm[:, None] * inv_norm[None, :]) / n
    corr_loss = jnp.sum(corr_abs * off) / (F * F)

    # --- DiversityLoss.entropy_loss ------------------------------------------
    p = sigsum / n
    ent = -(p * jnp.log(p + 1e-8) + (1.0 - p) * jnp.log(1.0 - p + 1e-8))
    entropy_loss = -jnp.mean(ent)

    # --- DiversityLoss.utilization_loss --------------------------------------
    util_loss = jnp.mean(jnp.maximum(0.001 - usage / n, 0.0))

    # --- RobustnesslLoss redundancy (Pearson off-diag MSE vs 0.7) ------------
    # TODO(synk): uncentered moments can cancel catastrophically when column
    # means dominate their std; subtract a per-column shift before accumulating
    # if tolerances tighten.
    mean = colsum / n
    var = (colsq - n * mean * mean) / (n - 1.0)
    std = jnp.sqrt(jnp.maximum(var, 0.0))
    cov = (gram - n * jnp.outer(mean, mean)) / (n - 1.0)
    corr_c = cov / (jnp.outer(std, std) + 1e-8)
    diff = jnp.abs(corr_c) - 0.7
    redundancy = jnp.sum(diff * diff * off) / (F * (F - 1))

    return jnp.stack([corr_loss, entropy_loss, util_loss, redundancy])


def feature_stats(acts):
    """Single pass over [B,S,F] activations -> the 4 diversity/redundancy scalars."""
    B, S, F = acts.shape
    n = B * S
    flat = acts.reshape(n, F)                 # free leading-dim merge, no cast

    # leave room for the double-buffered (F,F)+(8,F) output accumulator blocks
    fixed_out = 2 * (F * F + 8 * F) * 4
    budget = max(_WORKSET_BUDGET - fixed_out, 4 * 1024 * 1024)
    tile_rows = _pick_tile_rows(n, F, acts.dtype, budget=budget,
                                max_rows=_MAX_TILE_ROWS_STATS)
    total_tiles = int(pl.cdiv(n, tile_rows))
    n_chunks = 2 if total_tiles >= 2 else 1   # one chunk per TensorCore (v7x)
    steps = int(pl.cdiv(total_tiles, n_chunks))
    needs_mask = (n_chunks * steps * tile_rows) != n
    last_tile = total_tiles - 1               # clamp: padded tiles re-read it

    # TODO(synk): for F >~ 2048 the (F,F) f32 accumulator block should itself
    # be tiled into (F_tile, F) output blocks to stay inside v7x's 64 MiB VMEM.
    # TODO(synk): on v6e/v7x padding F to a multiple of 256 would fill the
    # 2x256^2 MXU (zero columns are harmless to every accumulated stat).
    gram_parts, stat_parts = pl.pallas_call(
        functools.partial(_feature_stats_kernel, n_total=n, n_features=F,
                          tile_rows=tile_rows, steps_per_chunk=steps,
                          needs_mask=needs_mask),
        out_shape=(jax.ShapeDtypeStruct((n_chunks, F, F), jnp.float32),
                   jax.ShapeDtypeStruct((n_chunks, 8, F), jnp.float32)),
        grid_spec=pltpu.PrefetchScalarGridSpec(
            num_scalar_prefetch=0,
            grid=(n_chunks, steps),
            in_specs=[pl.BlockSpec(
                (tile_rows, F),
                lambda c, j: (jnp.minimum(c * steps + j, last_tile), 0))],
            out_specs=(pl.BlockSpec((None, F, F), lambda c, j: (c, 0, 0)),
                       pl.BlockSpec((None, 8, F), lambda c, j: (c, 0, 0)))),
        compiler_params=pltpu.CompilerParams(
            dimension_semantics=("parallel", "arbitrary"),
            vmem_limit_bytes=_VMEM_LIMIT),
    )(flat)

    gram = jnp.sum(gram_parts, axis=0)
    stats = jnp.sum(stat_parts, axis=0)
    return _feature_epilogue(gram, stats[0], stats[1], stats[2], stats[3],
                             jnp.float32(n), F)


# ----------------------------------------------------------------------------
# MFSLoss wrapper (no learnable parameters; default weights from __init__)
# ----------------------------------------------------------------------------
def mfs_loss(outputs, labels, safety_labels=None, feature_activations=None,
             task_weight=1.0, safety_weight=0.5, diversity_weight=0.1,
             robustness_weight=0.05):
    if 'logits' in outputs:
        t_loss = task_loss(outputs['logits'], labels)
    else:
        t_loss = jnp.float32(0.0)

    if 'safety_logits' in outputs and safety_labels is not None:
        s_loss = safety_loss(outputs['safety_logits'], safety_labels)
    else:
        s_loss = jnp.float32(0.0)

    if feature_activations is not None:
        stats = [feature_stats(f) for f in feature_activations]
        # TODO(synk): the original DiversityLoss is called with the whole List
        # (a type bug in the reference: `.shape` on a list); we apply it to the
        # first layer's activations instead.
        c0, e0, u0 = stats[0][0], stats[0][1], stats[0][2]
        # DiversityLoss internal weights: 0.01*corr + 0.1*entropy + 0.01*util, *0.1
        d_loss = 0.1 * (0.01 * c0 + 0.1 * e0 + 0.01 * u0)
        r_loss = jnp.mean(jnp.stack([s[3] for s in stats]))
    else:
        d_loss = jnp.float32(0.0)
        r_loss = jnp.float32(0.0)

    return (task_weight * t_loss + safety_weight * s_loss +
            diversity_weight * d_loss + robustness_weight * r_loss)


# ----------------------------------------------------------------------------
# plain-JAX reference (mirrors the PyTorch math) for a sanity check
# ----------------------------------------------------------------------------
def reference_loss(logits, labels, safety_scores, safety_labels, feats):
    B, S, V = logits.shape
    sl = logits[:, :-1, :].reshape(-1, V).astype(jnp.float32)
    lb = labels[:, 1:].reshape(-1)
    valid = lb != -100
    m = jnp.max(sl, axis=-1)
    lse = m + jnp.log(jnp.sum(jnp.exp(sl - m[:, None]), axis=-1))
    tgt = jnp.take_along_axis(sl, jnp.clip(lb, 0, None)[:, None], axis=-1)[:, 0]
    task = jnp.sum(jnp.where(valid, lse - tgt, 0.0)) / jnp.sum(valid)

    p = safety_scores.astype(jnp.float32)
    y = safety_labels.astype(jnp.float32)
    bce = -jnp.mean(y * jnp.maximum(jnp.log(p), -100.0)
                    + (1 - y) * jnp.maximum(jnp.log(1 - p), -100.0))
    safe = (y == 0).astype(jnp.float32)
    unsafe = (y == 1).astype(jnp.float32)
    mrg = 0.1
    msafe = jnp.where(jnp.sum(safe) > 0,
                      jnp.sum(jnp.maximum(p - mrg, 0) * safe) / jnp.maximum(jnp.sum(safe), 1), 0.0)
    munsafe = jnp.where(jnp.sum(unsafe) > 0,
                        jnp.sum(jnp.maximum(1 - mrg - p, 0) * unsafe) / jnp.maximum(jnp.sum(unsafe), 1), 0.0)
    safety = bce + 0.1 * (msafe + munsafe)

    F = feats[0].shape[-1]
    eye = jnp.eye(F, dtype=jnp.float32)
    x = feats[0].reshape(-1, F).astype(jnp.float32)
    N = x.shape[0]
    normed = x / jnp.maximum(jnp.linalg.norm(x, axis=0, keepdims=True), 1e-12)
    corr = normed.T @ normed / N
    corr_loss = jnp.mean(jnp.abs(corr * (1 - eye)))
    probs = jax.nn.sigmoid(x).mean(axis=0)
    ent = -(probs * jnp.log(probs + 1e-8) + (1 - probs) * jnp.log(1 - probs + 1e-8))
    ent_loss = -ent.mean()
    usage = (jnp.abs(x) > 0.01).astype(jnp.float32).mean(axis=0)
    util = jnp.maximum(0.001 - usage, 0.0).mean()
    diversity = 0.1 * (0.01 * corr_loss + 0.1 * ent_loss + 0.01 * util)

    reds = []
    offmask = 1.0 - eye
    for f in feats:
        xf = f.reshape(-1, F).astype(jnp.float32)
        c = xf - xf.mean(axis=0, keepdims=True)
        cov = c.T @ c / (xf.shape[0] - 1)
        std = jnp.sqrt(jnp.diag(cov))
        cm = cov / (std[None, :] * std[:, None] + 1e-08)
        reds.append(jnp.sum(((jnp.abs(cm) - 0.7) ** 2) * offmask) / (F * (F - 1)))
    rob = jnp.mean(jnp.stack(reds))

    return 1.0 * task + 0.5 * safety + 0.1 * diversity + 0.05 * rob


if __name__ == "__main__":
    key = jax.random.PRNGKey(0)
    B, S, V, F, L = 2, 8, 128, 128, 2
    k1, k2, k3, k5 = jax.random.split(key, 4)

    logits = jax.random.normal(k1, (B, S, V), jnp.float32)
    labels = jax.random.randint(k2, (B, S), 0, V).astype(jnp.int32)
    labels = labels.at[0, 1].set(-100)                      # exercise ignore_index
    safety_scores = jax.nn.sigmoid(jax.random.normal(k3, (B,), jnp.float32))
    safety_labels = jnp.array([0.0, 1.0], dtype=jnp.float32)
    feat_keys = jax.random.split(k5, L)
    feats = [jax.random.normal(fk, (B, S, F), jnp.float32) for fk in feat_keys]

    outputs = {'logits': logits, 'safety_logits': safety_scores}
    total = mfs_loss(outputs, labels, safety_labels, feats)
    total = jax.block_until_ready(total)

    ref = reference_loss(logits, labels, safety_scores, safety_labels, feats)
    ref = jax.block_until_ready(ref)

    assert jnp.isfinite(total), "non-finite loss"
    assert abs(float(total) - float(ref)) <= 1e-4 + 1e-3 * abs(float(ref)), \
        f"mismatch: pallas={float(total)} ref={float(ref)}"
    print("KERNEL_OK")
</pallas_src>

<mosaic_0001>
module attributes {stable_mosaic.version = 11 : i64} {
  func.func @_ce_kernel(%arg0: i32, %arg1: i32, %arg2: memref<16x128xf32, #tpu.memory_space<vmem>>, %arg3: memref<16x1xi32, #tpu.memory_space<vmem>>, %arg4: memref<1x1x128xf32, #tpu.memory_space<vmem>>, %arg5: memref<16x1xf32, #tpu.memory_space<vmem>>, %arg6: memref<16x1xf32, #tpu.memory_space<vmem>>, %arg7: memref<16x1xf32, #tpu.memory_space<vmem>>) attributes {dimension_semantics = [#tpu.dimension_semantics<parallel>, #tpu.dimension_semantics<arbitrary>], iteration_bounds = array<i64: 1, 1>, scalar_prefetch = 0 : i64, scratch_operands = 3 : i64, tpu.core_type = #tpu.core_type<tc>, window_params = [{transform_indices = @transform_0, window_bounds = array<i64: 16, 128>}, {transform_indices = @transform_1, window_bounds = array<i64: 16, 1>}, {transform_indices = @transform_2, window_bounds = array<i64: 1, 1, 128>}]} {
    %c0_i32 = arith.constant 0 : i32
    %0 = arith.cmpi eq, %arg1, %c0_i32 : i32
    %1 = arith.extui %0 : i1 to i32
    %c0_i32_0 = arith.constant 0 : i32
    %2 = arith.cmpi ne, %1, %c0_i32_0 : i32
    scf.if %2 {
      %cst_21 = arith.constant -1.000000e+30 : f32
      %37 = vector.broadcast %cst_21 : f32 to vector<16x1xf32>
      %c0_22 = arith.constant 0 : index
      %c0_23 = arith.constant 0 : index
      %38 = vector.load %arg5[%c0_22, %c0_23] : memref<16x1xf32, #tpu.memory_space<vmem>>, vector<16x1xf32>
      tpu.vector_store %arg5[%c0_22, %c0_23], %37 {strides = array<i32>} : memref<16x1xf32, #tpu.memory_space<vmem>>, vector<16x1xf32>,
      %cst_24 = arith.constant 0.000000e+00 : f32
      %39 = vector.broadcast %cst_24 : f32 to vector<16x1xf32>
      %c0_25 = arith.constant 0 : index
      %c0_26 = arith.constant 0 : index
      %40 = vector.load %arg6[%c0_25, %c0_26] : memref<16x1xf32, #tpu.memory_space<vmem>>, vector<16x1xf32>
      tpu.vector_store %arg6[%c0_25, %c0_26], %39 {strides = array<i32>} : memref<16x1xf32, #tpu.memory_space<vmem>>, vector<16x1xf32>,
      %cst_27 = arith.constant 0.000000e+00 : f32
      %41 = vector.broadcast %cst_27 : f32 to vector<16x1xf32>
      %c0_28 = arith.constant 0 : index
      %c0_29 = arith.constant 0 : index
      %42 = vector.load %arg7[%c0_28, %c0_29] : memref<16x1xf32, #tpu.memory_space<vmem>>, vector<16x1xf32>
      tpu.vector_store %arg7[%c0_28, %c0_29], %41 {strides = array<i32>} : memref<16x1xf32, #tpu.memory_space<vmem>>, vector<16x1xf32>,
    } else {
    }
    %c0 = arith.constant 0 : index
    %c0_1 = arith.constant 0 : index
    %3 = vector.load %arg2[%c0, %c0_1] : memref<16x128xf32, #tpu.memory_space<vmem>>, vector<16x128xf32>
    %c0_2 = arith.constant 0 : index
    %c0_3 = arith.constant 0 : index
    %4 = vector.load %arg3[%c0_2, %c0_3] : memref<16x1xi32, #tpu.memory_space<vmem>>, vector<16x1xi32>
    %c128_i32 = arith.constant 128 : i32
    %5 = arith.muli %arg1, %c128_i32 : i32
    %6 = tpu.iota {dimensions = array<i32: 1>} : vector<16x128xi32>
    %7 = vector.broadcast %5 : i32 to vector<16x128xi32>
    %8 = arith.addi %7, %6 : vector<16x128xi32>
    %9 = vector.broadcast %4 : vector<16x1xi32> to vector<16x128xi32>
    %10 = arith.cmpi eq, %8, %9 : vector<16x128xi32>
    %c0_4 = arith.constant 0 : index
    %c0_5 = arith.constant 0 : index
    %11 = vector.load %arg7[%c0_4, %c0_5] : memref<16x1xf32, #tpu.memory_space<vmem>>, vector<16x1xf32>
    %cst = arith.constant 0.000000e+00 : f32
    %12 = vector.broadcast %cst : f32 to vector<16x128xf32>
    %13 = arith.select %10, %3, %12 : vector<16x128xi1>, vector<16x128xf32>
    %cst_6 = arith.constant dense<0.000000e+00> : vector<16xf32>
    %14 = vector.multi_reduction <add>, %13, %cst_6 [1] : vector<16x128xf32> to vector<16xf32>
    %15 = vector.shape_cast %14 : vector<16xf32> to vector<16x1xf32>
    %16 = arith.addf %11, %15 : vector<16x1xf32>
    %c0_7 = arith.constant 0 : index
    %c0_8 = arith.constant 0 : index
    %17 = vector.load %arg7[%c0_7, %c0_8] : memref<16x1xf32, #tpu.memory_space<vmem>>, vector<16x1xf32>
    tpu.vector_store %arg7[%c0_7, %c0_8], %16 {strides = array<i32>} : memref<16x1xf32, #tpu.memory_space<vmem>>, vector<16x1xf32>,
    %c0_9 = arith.constant 0 : index
    %c0_10 = arith.constant 0 : index
    %18 = vector.load %arg5[%c0_9, %c0_10] : memref<16x1xf32, #tpu.memory_space<vmem>>, vector<16x1xf32>
    %cst_11 = arith.constant dense<0xFF800000> : vector<16xf32>
    %19 = vector.multi_reduction <maximumf>, %3, %cst_11 [1] : vector<16x128xf32> to vector<16xf32>
    %20 = vector.shape_cast %19 : vector<16xf32> to vector<16x1xf32>
    %21 = arith.maximumf %18, %20 : vector<16x1xf32>
    %c0_12 = arith.constant 0 : index
    %c0_13 = arith.constant 0 : index
    %22 = vector.load %arg6[%c0_12, %c0_13] : memref<16x1xf32, #tpu.memory_space<vmem>>, vector<16x1xf32>
    %23 = arith.subf %18, %21 : vector<16x1xf32>
    %24 = math.exp %23 : vector<16x1xf32>
    %25 = arith.mulf %22, %24 : vector<16x1xf32>
    %26 = vector.broadcast %21 : vector<16x1xf32> to vector<16x128xf32>
    %27 = arith.subf %3, %26 : vector<16x128xf32>
    %28 = math.exp %27 : vector<16x128xf32>
    %cst_14 = arith.constant dense<0.000000e+00> : vector<16xf32>
    %29 = vector.multi_reduction <add>, %28, %cst_14 [1] : vector<16x128xf32> to vector<16xf32>
    %30 = vector.shape_cast %29 : vector<16xf32> to vector<16x1xf32>
    %31 = arith.addf %25, %30 : vector<16x1xf32>
    %c0_15 = arith.constant 0 : index
    %c0_16 = arith.constant 0 : index
    %32 = vector.load %arg6[%c0_15, %c0_16] : memref<16x1xf32, #tpu.memory_space<vmem>>, vector<16x1xf32>
    tpu.vector_store %arg6[%c0_15, %c0_16], %31 {strides = array<i32>} : memref<16x1xf32, #tpu.memory_space<vmem>>, vector<16x1xf32>,
    %c0_17 = arith.constant 0 : index
    %c0_18 = arith.constant 0 : index
    %33 = vector.load %arg5[%c0_17, %c0_18] : memref<16x1xf32, #tpu.memory_space<vmem>>, vector<16x1xf32>
    tpu.vector_store %arg5[%c0_17, %c0_18], %21 {strides = array<i32>} : memref<16x1xf32, #tpu.memory_space<vmem>>, vector<16x1xf32>,
    %c0_i32_19 = arith.constant 0 : i32
    %34 = arith.cmpi eq, %arg1, %c0_i32_19 : i32
    %35 = arith.extui %34 : i1 to i32
    %c0_i32_20 = arith.constant 0 : i32
    %36 = arith.cmpi ne, %35, %c0_i32_20 : i32
    scf.if %36 {
      %c-100_i32 = arith.constant -100 : i32
      %37 = vector.broadcast %c-100_i32 : i32 to vector<16x1xi32>
      %38 = arith.cmpi ne, %4, %37 : vector<16x1xi32>
      %c0_21 = arith.constant 0 : index
      %c0_22 = arith.constant 0 : index
      %39 = vector.load %arg5[%c0_21, %c0_22] : memref<16x1xf32, #tpu.memory_space<vmem>>, vector<16x1xf32>
      %c0_23 = arith.constant 0 : index
      %c0_24 = arith.constant 0 : index
      %40 = vector.load %arg6[%c0_23, %c0_24] : memref<16x1xf32, #tpu.memory_space<vmem>>, vector<16x1xf32>
      %41 = math.log %40 : vector<16x1xf32>
      %42 = arith.addf %39, %41 : vector<16x1xf32>
      %c0_25 = arith.constant 0 : index
      %c0_26 = arith.constant 0 : index
      %43 = vector.load %arg7[%c0_25, %c0_26] : memref<16x1xf32, #tpu.memory_space<vmem>>, vector<16x1xf32>
      %44 = arith.subf %42, %43 : vector<16x1xf32>
      %cst_27 = arith.constant 0.000000e+00 : f32
      %45 = vector.broadcast %cst_27 : f32 to vector<16x1xf32>
      %46 = arith.select %38, %44, %45 : vector<16x1xi1>, vector<16x1xf32>
      %47 = vector.shape_cast %46 : vector<16x1xf32> to vector<1x16x1xf32>
      %cst_28 = arith.constant dense<0.000000e+00> : vector<1xf32>
      %48 = vector.multi_reduction <add>, %47, %cst_28 [1, 2] : vector<1x16x1xf32> to vector<1xf32>
      %49 = vector.shape_cast %48 : vector<1xf32> to vector<1x1x1xf32>
      %50 = vector.extract %49[0, 0, 0] : f32 from vector<1x1x1xf32>
      %51 = arith.extui %38 : vector<16x1xi1> to vector<16x1xi32>
      %52 = arith.sitofp %51 : vector<16x1xi32> to vector<16x1xf32>
      %53 = vector.shape_cast %52 : vector<16x1xf32> to vector<1x16x1xf32>
      %cst_29 = arith.constant dense<0.000000e+00> : vector<1xf32>
      %54 = vector.multi_reduction <add>, %53, %cst_29 [1, 2] : vector<1x16x1xf32> to vector<1xf32>
      %55 = vector.shape_cast %54 : vector<1xf32> to vector<1x1x1xf32>
      %56 = vector.extract %55[0, 0, 0] : f32 from vector<1x1x1xf32>
      %57 = tpu.iota {dimensions = array<i32: 2>} : vector<1x1x128xi32>
      %c0_i32_30 = arith.constant 0 : i32
      %58 = vector.broadcast %c0_i32_30 : i32 to vector<1x1x128xi32>
      %59 = arith.cmpi eq, %57, %58 : vector<1x1x128xi32>
      %c1_i32 = arith.constant 1 : i32
      %60 = vector.broadcast %c1_i32 : i32 to vector<1x1x128xi32>
      %61 = arith.cmpi eq, %57, %60 : vector<1x1x128xi32>
      %cst_31 = arith.constant 0.000000e+00 : f32
      %62 = vector.broadcast %56 : f32 to vector<1x1x128xf32>
      %63 = vector.broadcast %cst_31 : f32 to vector<1x1x128xf32>
      %64 = arith.select %61, %62, %63 : vector<1x1x128xi1>, vector<1x1x128xf32>
      %65 = vector.broadcast %50 : f32 to vector<1x1x128xf32>
      %66 = arith.select %59, %65, %64 : vector<1x1x128xi1>, vector<1x1x128xf32>
      %c0_32 = arith.constant 0 : index
      %c0_33 = arith.constant 0 : index
      %c0_34 = arith.constant 0 : index
      %67 = vector.load %arg4[%c0_32, %c0_33, %c0_34] : memref<1x1x128xf32, #tpu.memory_space<vmem>>, vector<1x1x128xf32>
      tpu.vector_store %arg4[%c0_32, %c0_33, %c0_34], %66 {strides = array<i32>} : memref<1x1x128xf32, #tpu.memory_space<vmem>>, vector<1x1x128xf32>,
    } else {
    }
    return
  }
  func.func @transform_0(%arg0: i32, %arg1: i32) -> (i32, i32) {
    %c0_i32 = arith.constant 0 : i32
    return %arg0, %arg1 : i32, i32
  }
  func.func @transform_1(%arg0: i32, %arg1: i32) -> (i32, i32) {
    %c0_i32 = arith.constant 0 : i32
    %c0_i32_0 = arith.constant 0 : i32
    return %arg0, %c0_i32 : i32, i32
  }
  func.func @transform_2(%arg0: i32, %arg1: i32) -> (i32, i32, i32) {
    %c0_i32 = arith.constant 0 : i32
    %c0_i32_0 = arith.constant 0 : i32
    %c0_i32_1 = arith.constant 0 : i32
    return %arg0, %c0_i32, %c0_i32_0 : i32, i32, i32
  }
}

</mosaic_0001>

<bundles_post_ra>
// kernel: tpu_custom_call.1
= control target key start
LH: loop header
LB: loop body
LE: loop exit
PB: predicated region body
PF: predicated region fallthrough
CT: control target
= control target key end

     0   :  { %s292_s0 = inlined_call_operand.vmem [shape: f32[16,128], index: 0, kind: input, shape index: {}]   ;;  %s293_s1 = inlined_call_operand.vmem [shape: s32[16,1], index: 1, kind: input, shape index: {}]   ;;  %s294_s2 = inlined_call_operand.hbm [shape: f32[1,1,128], index: 2, kind: output, shape index: {}]  }
   0x1   :  { %v23_v0 = vld [vmem:[%s292_s0] sm:$0xff] }
   0x2   :  { %7 = vsyncpa [#allocation6], 0  ;;  %55 = vmax.xlane.f32.xlu0 %v23_v0  ;;  %v24_v1 = vld [vmem:[%s292_s0 + $0x8] sm:$0xff]  ;;  %vm16_vm0 = vcmask 7168   ;;  %v220_v2 = vmov -1e+30   ;;  %v28_v15 = vlaneseq }
   0x3   :  { %17 = vst.msk [vmem:[#allocation2] sm:$0xff] %vm16_vm0, %v220_v2  ;;  %v221_v3 = vmov 0   ;;  %v222_v4 = vmov 0.0   ;;  %v254_v5 = vld [vmem:[%s293_s1] sm:$0xff]  ;;  %v260_v6 = vld [vmem:[%s293_s1 + $0x8] sm:$0xff]  ;;  %s223_s1 = smov [#allocation5]  }
   0x4   :  { %18 = vst.msk [vmem:[#allocation2 + $0x8] sm:$0xff] %vm16_vm0, %v220_v2  ;;  %179 = vset.pattern.permute.xlu1 %v221_v3  ;;  %180 = vset.pattern.permute.xlu2 %v221_v3  ;;  %v265_v16 = vand.u32 127, %v28_v15  ;;  %vm100_vm3 = vcmp.ne.s32.totalorder %v254_v5, 4294967196  ;;  %vm101_vm4 = vcmp.ne.s32.totalorder %v260_v6, 4294967196  ;;  %s158_s16 = sshll.u32 %s223_s1, 4  ;;  %s160_s20 = sshll.u32 %s294_s2, 4  ;;  %s159_s16 = int_to_ptr.vmem [resolvable:$true] %s158_s16  ;;  %s161_s20 = int_to_ptr.hbm [resolvable:$true] %s160_s20 }
   0x5   :  { %181 = vset.pattern.permute.xlu0 %v221_v3  ;;  %19 = vst.msk [vmem:[#allocation3] sm:$0xff] %vm16_vm0, %v222_v4  ;;  %33 = vperm.xlu2 %180, %v254_v5   ;;  %v169_v38 = vsel %vm100_vm3, 1.0, %v222_v4  ;;  %v170_v42 = vsel %vm101_vm4, 1.0, %v222_v4 }
   0x6   :  { %20 = vst.msk [vmem:[#allocation3 + $0x8] sm:$0xff] %vm16_vm0, %v222_v4  ;;  %v134_v43 = vsel %vm16_vm0, %v169_v38, 0.0  ;;  %v135_v44 = vsel %vm16_vm0, %v170_v42, 0.0  ;;  %vm147_vm5 = vcmp.eq.s32.totalorder %v265_v16, 1  ;;  %vm146_vm6 = vcmp.eq.s32.totalorder %v265_v16, 0 }
   0x7   :  { %21 = vst.msk [vmem:[#allocation4] sm:$0xff] %vm16_vm0, %v222_v4  ;;  %v136_v46 = vadd.f32 %v135_v44, %v134_v43 }
   0x8   :  { %22 = vst.msk [vmem:[#allocation4 + $0x8] sm:$0xff] %vm16_vm0, %v222_v4 }
   0xa   :  { %57 = vmax.xlane.f32.xlu0 %v24_v1  ;;  %v53_v7 = vld [vmem:[#allocation2] sm:$0xff] }
   0xb   :  { %v54_v11 = vld [vmem:[#allocation2 + $0x8] sm:$0xff] }
   0xc   :  { %v61_v35 = vld [vmem:[#allocation3] sm:$0xff] }
   0xd   :  { %36 = vperm.xlu2 %180, %v260_v6   ;;  %v62_v41 = vld [vmem:[#allocation3 + $0x8] sm:$0xff] }
   0xe   :  { %v40_v30 = vld [vmem:[#allocation4] sm:$0xff] }
   0xf   :  { %v41_v45 = vld [vmem:[#allocation4 + $0x8] sm:$0xff] }
  0x5f   :  { %v34_v17 = vpop.permute.xlu2 %33 }
  0x60   :  { %vm38_vm1 = vcmp.eq.s32.totalorder %v265_v16, %v34_v17 }
  0x61   :  { %v42_v18 = vsel %vm38_vm1, %v23_v0, 0.0 }
  0x62   :  { %44 = vadd.xlane.f32.xlu2 %v42_v18 }
  0x67   :  { %v37_v26 = vpop.permute.xlu2 %36 }
  0x68   :  { %vm39_vm2 = vcmp.eq.s32.totalorder %v265_v16, %v37_v26 }
  0x69   :  { %v43_v27 = vsel %vm39_vm2, %v24_v1, 0.0 }
  0x75   :  { %v56_v8 = vpop.xlane.xlu0 %55 }
  0x76   :  { %v59_v9 = vmax.f32 %v53_v7, %v56_v8 }
  0x78   :  { %v63_v10 = vsub.f32 %v53_v7, %v59_v9  ;;  %95 = vst.msk [vmem:[#allocation2] sm:$0xff] %vm16_vm0, %v59_v9  ;;  %73 = vperm.xlu1 %179, %v59_v9  }
  0x7a   :  { %v65_v32 = vmul.f32 1.442695, %v63_v10 }
  0x7d   :  { %v58_v12 = vpop.xlane.xlu0 %57 }
  0x7e   :  { %v60_v13 = vmax.f32 %v54_v11, %v58_v12 }
  0x7f   :  { %v102_v56 = vld [vmem:[#allocation2] sm:$0xff] }
  0x80   :  { %v64_v14 = vsub.f32 %v54_v11, %v60_v13  ;;  %96 = vst.msk [vmem:[#allocation2 + $0x8] sm:$0xff] %vm16_vm0, %v60_v13  ;;  %78 = vperm.xlu1 %179, %v60_v13  }
  0x82   :  { %v67_v33 = vmul.f32 1.442695, %v64_v14 }
  0x87   :  { %v103_v62 = vld [vmem:[#allocation2 + $0x8] sm:$0xff] }
  0xd5   :  { %v45_v29 = vpop.xlane.xlu2 %44 }
  0xd6   :  { %v48_v31 = vadd.f32 %v45_v29, %v40_v30 }
  0xd8   :  { %51 = vst.msk [vmem:[#allocation4] sm:$0xff] %vm16_vm0, %v48_v31 }
  0xdf   :  { %v112_v58 = vld [vmem:[#allocation4] sm:$0xff] }
  0xea   :  { %v74_v19 = vpop.permute.xlu1 %73 }
  0xeb   :  { %v81_v20 = vsub.f32 %v23_v0, %v74_v19 }
  0xed   :  { %v83_v21 = vmul.f32 1.442695, %v81_v20 }
  0xef   :  { %182 = vpow2.f32 %v83_v21 }
  0xf2   :  { %v79_v22 = vpop.permute.xlu1 %78 }
  0xf3   :  { %v82_v23 = vsub.f32 %v24_v1, %v79_v22 }
  0xf5   :  { %v183_v24 = vpop.eup %182  ;;  %v85_v25 = vmul.f32 1.442695, %v82_v23 }
  0xf6   :  { %87 = vadd.xlane.f32.xlu0 %v183_v24 }
  0xf7   :  { %184 = vpow2.f32 %v85_v25 }
  0xf8   :  { %186 = vpow2.f32 %v65_v32 }
  0xf9   :  { %188 = vpow2.f32 %v67_v33 }
  0xfd   :  { %v185_v28 = vpop.eup %184 }
  0xfe   :  { %89 = vadd.xlane.f32.xlu1 %v185_v28  ;;  %46 = vadd.xlane.f32.xlu0 %v43_v27  ;;  %v187_v34 = vpop.eup %186 }
  0xff   :  { %v69_v36 = vmul.f32 %v187_v34, %v61_v35  ;;  %v189_v40 = vpop.eup %188 }
 0x100   :  { %v70_v47 = vmul.f32 %v189_v40, %v62_v41 }
 0x169   :  { %v88_v37 = vpop.xlane.xlu0 %87 }
 0x16a   :  { %v91_v39 = vadd.f32 %v88_v37, %v69_v36 }
 0x16c   :  { %93 = vst.msk [vmem:[#allocation3] sm:$0xff] %vm16_vm0, %v91_v39 }
 0x171   :  { %v90_v48 = vpop.xlane.xlu1 %89  ;;  %v47_v49 = vpop.xlane.xlu0 %46 }
 0x172   :  { %v92_v50 = vadd.f32 %v90_v48, %v70_v47  ;;  %v49_v51 = vadd.f32 %v47_v49, %v41_v45 }
 0x173   :  { %v104_v52 = vld [vmem:[#allocation3] sm:$0xff] }
 0x174   :  { %94 = vst.msk [vmem:[#allocation3 + $0x8] sm:$0xff] %vm16_vm0, %v92_v50  ;;  %190 = vlog2.f32 %v104_v52 }
 0x175   :  { %52 = vst.msk [vmem:[#allocation4 + $0x8] sm:$0xff] %vm16_vm0, %v49_v51 }
 0x17a   :  { %v191_v53 = vpop.eup %190 }
 0x17b   :  { %v105_v54 = vld [vmem:[#allocation3 + $0x8] sm:$0xff]  ;;  %v107_v55 = vmul.f32 0.6931472, %v191_v53 }
 0x17c   :  { %192 = vlog2.f32 %v105_v54  ;;  %v113_v0 = vld [vmem:[#allocation4 + $0x8] sm:$0xff] }
 0x17d   :  { %v110_v57 = vadd.f32 %v107_v55, %v102_v56 }
 0x17f   :  { %v114_v61 = vsub.f32 %v110_v57, %v112_v58 }
 0x181   :  { %v116_v2 = vsel %vm100_vm3, %v114_v61, 0.0 }
 0x182   :  { %v193_v59 = vpop.eup %192  ;;  %v118_v4 = vsel %vm16_vm0, %v116_v2, 0.0 }
 0x183   :  { %v109_v60 = vmul.f32 0.6931472, %v193_v59 }
 0x185   :  { %v111_v63 = vadd.f32 %v109_v60, %v103_v62 }
 0x187   :  { %v115_v1 = vsub.f32 %v111_v63, %v113_v0 }
 0x189   :  { %v117_v3 = vsel %vm101_vm4, %v115_v1, 0.0 }
 0x18a   :  { %v119_v7 = vsel %vm16_vm0, %v117_v3, 0.0 }
 0x18b   :  { %v120_v8 = vadd.f32 %v119_v7, %v118_v4 }
 0x18d   :  { %121 = vadd.xlane.f32.xlu0 %v120_v8 }
 0x195   :  { %137 = vadd.xlane.f32.xlu0 %v136_v46 }
 0x200   :  { %v122_v9 = vpop.xlane.xlu0 %121 }
 0x201   :  { %v123_v10 = vrot.slane %v122_v9, 4 }
 0x203   :  { %v124_v11 = vadd.f32 %v123_v10, %v122_v9 }
 0x205   :  { %v125_v12 = vrot.slane %v124_v11, 2 }
 0x207   :  { %v126_v13 = vadd.f32 %v125_v12, %v124_v11 }
 0x208   :  { %v138_v14 = vpop.xlane.xlu0 %137 }
 0x209   :  { %v139_v15 = vrot.slane %v138_v14, 4  ;;  %v127_v17 = vrot.slane %v126_v13, 1 }
 0x20b   :  { %v140_v5 = vadd.f32 %v139_v15, %v138_v14  ;;  %v128_v18 = vadd.f32 %v127_v17, %v126_v13 }
 0x20d   :  { %v141_v19 = vrot.slane %v140_v5, 2  ;;  %171 = vpush %v128_v18 }
 0x20f   :  { %v142_v6 = vadd.f32 %v141_v19, %v140_v5 }
 0x211   :  { %v143_v20 = vrot.slane %v142_v6, 1 }
 0x213   :  { %v144_v21 = vadd.f32 %v143_v20, %v142_v6 }
 0x215   :  { %173 = vpush %v144_v21 }
 0x23e   :  { %s172_s17 = spop %171 }
 0x23f   :  { %v150_v23 = vstv %s172_s17 }
 0x246   :  { %s174_s21 = spop %173 }
 0x247   :  { %v148_v22 = vstv %s174_s21 }
 0x248   :  { %v149_v24 = vsel %vm147_vm5, %v148_v22, 0.0 }
 0x249   :  { %v151_v25 = vsel %vm146_vm6, %v150_v23, %v149_v24 }
 0x24a   :  { %152 = vst [vmem:[#allocation5] sm:$0x1] %v151_v25 }
 0x24b   :  { %163 = dma.vmem_to_hbm [thread:$0]  %s159_s16, 16, %s161_s20, [#allocation6]  }
 0x24c   :  { %218 = dma.done.wait [#allocation6], 16  }
 0x24d   :  { %219 = vsyncadd [#allocation6], 4294967280 }
 0x24e   :  { %168 = vsyncpa [#allocation6], 1 }

</bundles_post_ra>
